<compile_context>
chip_gen: v6e
topology: v6e:2x2x1
jax: 0.10.0
libtpu: 0.0.40
codegen_flags: <defaults>
</compile_context>

<pallas_src>
import numpy as np
import jax
import jax.numpy as jnp
from jax import lax
from jax.experimental import pallas as pl
from jax.experimental.pallas import tpu as pltpu


# ---------------------------------------------------------------------------
# Fused Conv3x3(SAME) + bias + ReLU (+ optional MaxPool2x2) kernel.
# ---------------------------------------------------------------------------
def _make_conv_kernel(H, W, Cin, Cout, pool):
    n = W * Cout  # lane width of the (pre-pool) output row

    def kernel(x_ref, wb_ref, b_ref, *rest):
        if pool:
            se_ref, so_ref, o_ref = rest
        else:
            (o_ref,) = rest

        x = x_ref[0]                                        # (H, W*Cin) bf16, lane-dense
        # Single MXU matmul for all 9 taps: host-packed banded weights fold the kx taps
        # (and the W zero padding) into K=W*Cin and stack the 3 ky rows along N=3*W*Cout.
        z = jnp.dot(x, wb_ref[...], preferred_element_type=jnp.float32)   # (H, 3n) f32
        z0 = z[:, 0:n]            # contribution of input row r through kernel row ky=0
        z1 = z[:, n:2 * n]        # ky=1 (row-aligned)
        z2 = z[:, 2 * n:3 * n]    # ky=2
        # ky row shifts via XLU roll + boundary mask == in-kernel zero halo (no jnp.pad).
        rows = lax.broadcasted_iota(jnp.int32, (H, n), 0)
        acc = (z1
               + jnp.where(rows >= 1, pltpu.roll(z0, shift=1, axis=0), 0.0)
               + jnp.where(rows <= H - 2, pltpu.roll(z2, shift=H - 1, axis=0), 0.0))

        # Bias + ReLU in f32 (v5e has no bf16 VPU); cast only at the store.
        y = jnp.maximum(acc + b_ref[...], 0.0)              # (H, W*Cout) f32

        if pool:
            # Fused 2x2 max-pool: H direction via strided sublane max, W direction via
            # exact 0/1 selector matmuls (lane gather/compaction done on the MXU).
            y = jnp.maximum(y[0::2, :], y[1::2, :])         # (H/2, W*Cout)
            y = jnp.maximum(
                jnp.dot(y, se_ref[...], preferred_element_type=jnp.float32),
                jnp.dot(y, so_ref[...], preferred_element_type=jnp.float32))

        o_ref[...] = y[None].astype(o_ref.dtype)            # single lane-dense store

    return kernel


def conv3x3_relu_block(x, wb, bflat, se, so, *, H, W, Cin, Cout, pool):
    """Fused Conv3x3(SAME)+bias+ReLU(+MaxPool2x2). x: (N, H, W*Cin) bf16."""
    N = x.shape[0]
    Ho, Wo = (H // 2, W // 2) if pool else (H, W)
    in_specs = [
        pl.BlockSpec((1, H, W * Cin), lambda i: (i, 0, 0)),
        pl.BlockSpec((W * Cin, 3 * W * Cout), lambda i: (0, 0)),
        pl.BlockSpec((1, W * Cout), lambda i: (0, 0)),
    ]
    args = [x, wb, bflat]
    if pool:
        in_specs += [pl.BlockSpec((W * Cout, Wo * Cout), lambda i: (0, 0)),
                     pl.BlockSpec((W * Cout, Wo * Cout), lambda i: (0, 0))]
        args += [se, so]
    return pl.pallas_call(
        _make_conv_kernel(H, W, Cin, Cout, pool),
        out_shape=jax.ShapeDtypeStruct((N, Ho, Wo * Cout), jnp.bfloat16),
        grid=(N,),
        in_specs=in_specs,
        out_specs=pl.BlockSpec((1, Ho, Wo * Cout), lambda i: (i, 0, 0)),
        compiler_params=pltpu.CompilerParams(dimension_semantics=("parallel",)),
    )(*args)


# ---------------------------------------------------------------------------
# Host-side pre-packing of weights / bias / pool selectors into kernel layout.
# ---------------------------------------------------------------------------
def parse_cfg(cfg):
    """[(out_channels, fuse_pool_after_this_conv)] with every 'M' fused into the conv before it."""
    layers = []
    for v in cfg:
        if v == 'M':
            assert layers and not layers[-1][1], "'M' must follow a conv layer"
            layers[-1] = (layers[-1][0], True)
        else:
            layers.append((int(v), False))
    return layers


def _pack_conv_weights(w, W):
    """HWIO (3,3,Cin,Cout) -> banded (W*Cin, 3*W*Cout) bf16.

    Column block ky holds, for each output column px, the kx taps gathered from input
    columns px+kx-1 (out-of-range taps are simply absent == SAME zero padding), so one
    (H, W*Cin) x (W*Cin, 3*W*Cout) matmul evaluates all 9 taps, one ky row-shift each.
    """
    w = np.asarray(w, np.float32)
    Cin, Cout = w.shape[2], w.shape[3]
    n = W * Cout
    wb = np.zeros((W * Cin, 3 * n), np.float32)
    for ky in range(3):
        for kx in range(3):
            for px in range(W):
                q = px + kx - 1          # input column feeding output column px
                if 0 <= q < W:
                    wb[q * Cin:(q + 1) * Cin,
                       ky * n + px * Cout: ky * n + (px + 1) * Cout] = w[ky, kx]
    return jnp.asarray(wb, jnp.bfloat16)


def _pack_bias(b, W):
    return jnp.asarray(np.tile(np.asarray(b, np.float32), W)[None, :])   # (1, W*Cout) f32


def _pool_selectors(W, Cout):
    """0/1 matrices gathering even / odd output columns for the 1x2 W-pool compaction."""
    Wo = W // 2
    se = np.zeros((W * Cout, Wo * Cout), np.float32)
    so = np.zeros((W * Cout, Wo * Cout), np.float32)
    for px in range(Wo):
        for c in range(Cout):
            se[(2 * px) * Cout + c, px * Cout + c] = 1.0
            so[(2 * px + 1) * Cout + c, px * Cout + c] = 1.0
    return jnp.asarray(se), jnp.asarray(so)


def pack_vgg_params(params, cfg, in_channels, H, W):
    layers = parse_cfg(cfg)
    packed = []
    cin, h, w = in_channels, H, W
    for (wgt, b), (cout, pool) in zip(params, layers):
        se, so = _pool_selectors(w, cout) if pool else (None, None)
        packed.append(dict(wb=_pack_conv_weights(wgt, w), b=_pack_bias(b, w),
                           se=se, so=so, dims=(h, w, cin, cout, pool)))
        cin = cout
        if pool:
            h, w = h // 2, w // 2
    return packed


# ---------------------------------------------------------------------------
# VGG "features" config (small VGG-style stack), deterministic params.
# ---------------------------------------------------------------------------
CFG = [8, 8, 'M', 16, 16, 'M']


def init_params(key, cfg, in_channels=3):
    params = []
    c_in = in_channels
    for v in cfg:
        if v == 'M':
            continue
        key, kw, kb = jax.random.split(key, 3)
        w = jax.random.normal(kw, (3, 3, c_in, v), jnp.float32) * 0.1     # HWIO
        b = jax.random.normal(kb, (v,), jnp.float32) * 0.01
        params.append((w, b))
        c_in = v
    return params


def vgg_features(x_nchw, packed):
    """Pallas implementation of VGG.forward(x) = self.features(x). NCHW in/out."""
    N, C, H, W = x_nchw.shape
    # NCHW -> lane-dense (N, H, W*C) bf16 (the reshape after the transpose is a free bitcast).
    x = jnp.transpose(x_nchw, (0, 2, 3, 1)).reshape(N, H, W * C).astype(jnp.bfloat16)
    for layer in packed:
        h, w, cin, cout, pool = layer["dims"]
        x = conv3x3_relu_block(x, layer["wb"], layer["b"], layer["se"], layer["so"],
                               H=h, W=w, Cin=cin, Cout=cout, pool=pool)
    h, w, cin, cout, pool = packed[-1]["dims"]
    ho, wo = (h // 2, w // 2) if pool else (h, w)
    out = x.reshape(N, ho, wo, cout).astype(jnp.float32)
    return jnp.transpose(out, (0, 3, 1, 2))                 # NHWC -> NCHW


def vgg_features_ref(x_nchw, params, cfg):
    """Pure-JAX reference with the same bf16 inter-layer quantization."""
    layers = parse_cfg(cfg)
    x = jnp.transpose(x_nchw, (0, 2, 3, 1)).astype(jnp.bfloat16)
    for (w, b), (_, pool) in zip(params, layers):
        y = lax.conv_general_dilated(
            x, w.astype(jnp.bfloat16), (1, 1), 'SAME',
            dimension_numbers=('NHWC', 'HWIO', 'NHWC'),
            preferred_element_type=jnp.float32)
        y = jnp.maximum(y + b.astype(jnp.float32), 0.0)
        if pool:
            y = lax.reduce_window(y, -jnp.inf, lax.max,
                                  (1, 2, 2, 1), (1, 2, 2, 1), 'VALID')
        x = y.astype(jnp.bfloat16)
    return jnp.transpose(x.astype(jnp.float32), (0, 3, 1, 2))


if __name__ == "__main__":
    key = jax.random.PRNGKey(0)
    kx, kp = jax.random.split(key)
    x = jax.random.normal(kx, (2, 3, 16, 16), jnp.float32)   # NCHW like PyTorch
    params = init_params(kp, CFG, in_channels=3)
    packed = pack_vgg_params(params, CFG, in_channels=3, H=16, W=16)

    out = jax.block_until_ready(vgg_features(x, packed))
    ref = jax.block_until_ready(vgg_features_ref(x, params, CFG))

    assert out.shape == (2, 16, 4, 4), out.shape
    err = float(jnp.max(jnp.abs(out - ref)))
    assert err < 3e-2, err
    print("KERNEL_OK")
</pallas_src>

<mosaic_0001>
module attributes {stable_mosaic.version = 11 : i64} {
  func.func @kernel(%arg0: i32, %arg1: memref<1x16x48xbf16, #tpu.memory_space<vmem>>, %arg2: memref<48x384xbf16, #tpu.memory_space<vmem>>, %arg3: memref<1x128xf32, #tpu.memory_space<vmem>>, %arg4: memref<1x16x128xbf16, #tpu.memory_space<vmem>>) attributes {dimension_semantics = [#tpu.dimension_semantics<parallel>], iteration_bounds = array<i64: 2>, scalar_prefetch = 0 : i64, scratch_operands = 0 : i64, tpu.core_type = #tpu.core_type<tc>, window_params = [{transform_indices = @transform_0, window_bounds = array<i64: 1, 16, 48>}, {pipeline_mode = #tpu.pipeline_mode<synchronous>, transform_indices = @transform_1, window_bounds = array<i64: 48, 384>}, {pipeline_mode = #tpu.pipeline_mode<synchronous>, transform_indices = @transform_2, window_bounds = array<i64: 1, 128>}, {transform_indices = @transform_3, window_bounds = array<i64: 1, 16, 128>}]} {
    %c0 = arith.constant 0 : index
    %c0_0 = arith.constant 0 : index
    %c0_1 = arith.constant 0 : index
    %0 = vector.load %arg1[%c0, %c0_0, %c0_1] : memref<1x16x48xbf16, #tpu.memory_space<vmem>>, vector<1x16x48xbf16>
    %1 = vector.shape_cast %0 : vector<1x16x48xbf16> to vector<16x48xbf16>
    %c0_2 = arith.constant 0 : index
    %c0_3 = arith.constant 0 : index
    %2 = vector.load %arg2[%c0_2, %c0_3] : memref<48x384xbf16, #tpu.memory_space<vmem>>, vector<48x384xbf16>
    %cst = arith.constant dense<0.000000e+00> : vector<16x384xf32>
    %3 = tpu.matmul %1, %2, %cst {dimension_numbers = #tpu.dot_dimension_numbers<[1], [0], [0], [1], [0, 0, 1, 1], [], []>} : vector<16x48xbf16>, vector<48x384xbf16>, vector<16x384xf32> -> vector<16x384xf32>
    %4 = vector.extract_strided_slice %3 {offsets = [0, 0], sizes = [16, 128], strides = [1, 1]} : vector<16x384xf32> to vector<16x128xf32>
    %5 = vector.extract_strided_slice %3 {offsets = [0, 128], sizes = [16, 128], strides = [1, 1]} : vector<16x384xf32> to vector<16x128xf32>
    %6 = vector.extract_strided_slice %3 {offsets = [0, 256], sizes = [16, 128], strides = [1, 1]} : vector<16x384xf32> to vector<16x128xf32>
    %7 = tpu.iota {dimensions = array<i32: 0>} : vector<16x128xi32>
    %c1_i32 = arith.constant 1 : i32
    %8 = vector.broadcast %c1_i32 : i32 to vector<16x128xi32>
    %9 = arith.cmpi sge, %7, %8 : vector<16x128xi32>
    %c1_i32_4 = arith.constant 1 : i32
    %10 = tpu.dynamic_rotate %4 by %c1_i32_4 dim 0 : vector<16x128xf32>, i32 -> vector<16x128xf32>
    %cst_5 = arith.constant 0.000000e+00 : f32
    %11 = vector.broadcast %cst_5 : f32 to vector<16x128xf32>
    %12 = arith.select %9, %10, %11 : vector<16x128xi1>, vector<16x128xf32>
    %13 = arith.addf %5, %12 : vector<16x128xf32>
    %c14_i32 = arith.constant 14 : i32
    %14 = vector.broadcast %c14_i32 : i32 to vector<16x128xi32>
    %15 = arith.cmpi sle, %7, %14 : vector<16x128xi32>
    %c15_i32 = arith.constant 15 : i32
    %16 = tpu.dynamic_rotate %6 by %c15_i32 dim 0 : vector<16x128xf32>, i32 -> vector<16x128xf32>
    %cst_6 = arith.constant 0.000000e+00 : f32
    %17 = vector.broadcast %cst_6 : f32 to vector<16x128xf32>
    %18 = arith.select %15, %16, %17 : vector<16x128xi1>, vector<16x128xf32>
    %19 = arith.addf %13, %18 : vector<16x128xf32>
    %c0_7 = arith.constant 0 : index
    %c0_8 = arith.constant 0 : index
    %20 = vector.load %arg3[%c0_7, %c0_8] : memref<1x128xf32, #tpu.memory_space<vmem>>, vector<1x128xf32>
    %21 = vector.broadcast %20 : vector<1x128xf32> to vector<16x128xf32>
    %22 = arith.addf %19, %21 : vector<16x128xf32>
    %cst_9 = arith.constant 0.000000e+00 : f32
    %23 = vector.broadcast %cst_9 : f32 to vector<16x128xf32>
    %24 = arith.maximumf %22, %23 : vector<16x128xf32>
    %25 = vector.shape_cast %24 : vector<16x128xf32> to vector<1x16x128xf32>
    %26 = arith.truncf %25 : vector<1x16x128xf32> to vector<1x16x128xbf16>
    %c0_10 = arith.constant 0 : index
    %c0_11 = arith.constant 0 : index
    %c0_12 = arith.constant 0 : index
    %27 = vector.load %arg4[%c0_10, %c0_11, %c0_12] : memref<1x16x128xbf16, #tpu.memory_space<vmem>>, vector<1x16x128xbf16>
    tpu.vector_store %arg4[%c0_10, %c0_11, %c0_12], %26 {strides = array<i32>} : memref<1x16x128xbf16, #tpu.memory_space<vmem>>, vector<1x16x128xbf16>,
    return
  }
  func.func @transform_0(%arg0: i32) -> (i32, i32, i32) {
    %c0_i32 = arith.constant 0 : i32
    %c0_i32_0 = arith.constant 0 : i32
    %c0_i32_1 = arith.constant 0 : i32
    return %arg0, %c0_i32, %c0_i32_0 : i32, i32, i32
  }
  func.func @transform_1(%arg0: i32) -> (i32, i32) {
    %c0_i32 = arith.constant 0 : i32
    %c0_i32_0 = arith.constant 0 : i32
    %c0_i32_1 = arith.constant 0 : i32
    return %c0_i32, %c0_i32_0 : i32, i32
  }
  func.func @transform_2(%arg0: i32) -> (i32, i32) {
    %c0_i32 = arith.constant 0 : i32
    %c0_i32_0 = arith.constant 0 : i32
    %c0_i32_1 = arith.constant 0 : i32
    return %c0_i32, %c0_i32_0 : i32, i32
  }
  func.func @transform_3(%arg0: i32) -> (i32, i32, i32) {
    %c0_i32 = arith.constant 0 : i32
    %c0_i32_0 = arith.constant 0 : i32
    %c0_i32_1 = arith.constant 0 : i32
    return %arg0, %c0_i32, %c0_i32_0 : i32, i32, i32
  }
}

</mosaic_0001>

<bundles_post_ra>
// kernel: tpu_custom_call.1
= control target key start
LH: loop header
LB: loop body
LE: loop exit
PB: predicated region body
PF: predicated region fallthrough
CT: control target
= control target key end

     0   :  { %8 = vsyncpa [#allocation3], 0  ;;  %s978_s0 = inlined_call_operand.hbm [shape: bf16[2,16,48], index: 0, kind: input, shape index: {}]   ;;  %s979_s1 = inlined_call_operand.hbm [shape: bf16[48,384], index: 1, kind: input, shape index: {}]   ;;  %s980_s2 = inlined_call_operand.vmem [shape: f32[1,128], index: 2, kind: input, shape index: {}]   ;;  %s981_s3 = inlined_call_operand.hbm [shape: bf16[2,16,128], index: 3, kind: output, shape index: {}]  }
   0x1   :  { %10 = vsyncpa [#allocation3 + $0x1], 0 }
   0x2   :  { %11 = vsyncpa [#allocation6], 0 }
   0x3   :  { %12 = vsyncpa [#allocation4], 0 }
   0x4   :  { %14 = vsyncpa [#allocation4 + $0x1], 0  ;;  %s792_s12 = smov 0   ;;  %s794_s13 = smov 0  }
   0x5   :  { %s796_s14 = smov 0   ;;  %s798_s15 = smov 0  }
   0x6 LB: > { %s813_s16 = sadd.s32 4294967295, %s758_s15   ;;  %s503_s17 = sadd.s32 4294967294, %s758_s15   ;;  %s758_s15 = sphi %s798_s15, %s1003_s15   ;;  %s754_s14 = sphi %s796_s14, %s1002_s14   ;;  %s750_s13 = sphi %s794_s13, %s1001_s13   ;;  %s746_s12 = sphi %s792_s12, %s1000_s12  }
   0x7   : > { %p40_p0 = scmp.ne.s32.totalorder %s750_s13, %s746_s12  ;;  %p982_p1 = scmp.eq.s32.totalorder %s813_s16, 0 }
   0x8   : > { %p112_p3 = scmp.eq.s32.totalorder %s503_s17, 1  ;;  %p504_p5 = scmp.ge.s32.totalorder %s758_s15, 1 }
   0x9   : > { %p822_p4 = por %p982_p1, %p40_p0  ;;  %p119_p7 = scmp.lt.s32.totalorder %s758_s15, 3 }
   0xa   : > { %p827_p6 = por %p112_p3, %p40_p0  ;;  %s760_s21 = smov [#allocation5]  }
   0xb   : > { %s986_s18 = scalar_select %p822_p4, 1, 0 }
   0xc   : > { %s987_s19 = scalar_select %p827_p6, 1, 0 }
   0xd   : > { %p832_p8 = pnand %p504_p5, %p119_p7  ;;  %s131_s22 = sshll.u32 %s760_s21, 4  ;;  %s132_s22 = int_to_ptr.vmem [resolvable:$true] %s131_s22 }
   0xe   : > { %s846_s24 = sadd.s32 1, %s758_s15   ;;  %s27_s25 = sadd.s32 1, %s754_s14 }
   0xf   : > { %s988_s20 = scalar_select %p832_p8, 1, 0 }
  0x10   : > { %p565_p9 = pneg %p832_p8  ;;  %s24_s26 = ssub.s32 %s758_s15, %s846_s24 }
  0x11   : > { %s647_s27 = scalar_lea.vmem %s132_s22, 1152  ;;  %p655_p5 = scmp.lt.s32.totalorder %s132_s22, %s132_s22 }
  0x12   : > { %p841_p11 = pnand %p565_p9, %p982_p1  ;;  %p648_p13 = scmp.ne.s32.totalorder %s132_s22, %s647_s27 }
  0x13   : > { %p656_p7 = scmp.lt.s32.totalorder %s647_s27, %s647_s27 }
  0x14   : > { %p638_p12 = pneg %p841_p11 }
  0x15   : > { %p657_p10 = por %p656_p7, %p655_p5 }
  0x16   : > { %p650_p0 = pnand %p648_p13, %p638_p12 }
  0x18   : > { %p651_p3 = pneg %p650_p0 }
  0x1a   : > { %p658_p2 = pnand %p657_p10, %p651_p3 }
  0x1c   : > { %661 = shalt.err (!%p658_p2)
}
  0x1d   : > { %s761_s28 = smov 192   ;;  %s762_s29 = smov 12  }
  0x1e   : > { %568 = dma.hbm_to_vmem [thread:$0]  (!%p841_p11), %s979_s1, 1152, %s132_s22, [#allocation6], %s761_s28, %s761_s28, %s762_s29  }
  0x1f   : > { %p25_p9 = scmp.eq.s32.totalorder %s24_s26, 0  ;;  %p34_p12 = scmp.ne.s32.totalorder %s754_s14, %s750_s13 }
  0x20   : > { %p35_p10 = scmp.eq.s32.totalorder %s758_s15, 0  ;;  %p578_p2 = scmp.lt.s32.totalorder %s758_s15, 2 }
  0x21   : > { %s863_s5 = scalar_select %p25_p9, %s754_s14, %s27_s25  }
  0x22   : > { %p36_p13 = por %p35_p10, %p34_p12  ;;  %p990_p0 = scmp.eq.s32.totalorder %s813_s16, 1 }
  0x23   : > { %s148_s7 = sand.u32 1, %s754_s14   ;;  %s534_s8 = sshll.u32 %s758_s15, 7 }
  0x24   : > { %p867_p3 = por %p990_p0, %p34_p12  ;;  %s507_s9 = sshll.u32 %s148_s7, 3 }
  0x25   : > { %s876_s17 = scalar_lea.hbm %s978_s0, %s534_s8  ;;  %s152_s21 = scalar_lea.vmem [#allocation2], %s507_s9 }
  0x26   : > { %s991_s6 = scalar_select %p867_p3, 1, 0 }
  0x27   : > { %s159_s22 = sshll.u32 %s152_s21, 4  ;;  %p878_p11 = pnand %p578_p2, %p36_p13  ;;  %s882_s22 = int_to_ptr.vmem [resolvable:$true] %s159_s22 }
  0x28   : > { %s884_s25 = scalar_lea.sflag [#allocation3], %s148_s7  ;;  %s662_s26 = scalar_lea.hbm %s876_s17, 128 }
  0x29   : > { %p663_p5 = scmp.ne.s32.totalorder %s876_s17, %s662_s26  ;;  %p664_p7 = pneg %p878_p11 }
  0x2a   : > { %s667_s29 = scalar_lea.hbm %s978_s0, 256  ;;  %p668_p10 = scmp.lt.s32.totalorder %s876_s17, %s978_s0 }
  0x2b   : > { %p665_p9 = pnand %p664_p7, %p663_p5  ;;  %p669_p2 = scmp.lt.s32.totalorder %s667_s29, %s662_s26 }
  0x2d   : > { %p666_p12 = pneg %p665_p9  ;;  %p670_p13 = por %p669_p2, %p668_p10 }
  0x2f   : > { %p671_p0 = pnand %p670_p13, %p666_p12 }
  0x31   : > { %674 = shalt.err (!%p671_p0)
}
  0x32   : > { %s675_s7 = scalar_lea.vmem %s882_s22, 128  ;;  %s763_s8 = smov [#allocation2]  }
  0x33   : > { %p676_p1 = scmp.ne.s32.totalorder %s882_s22, %s675_s7  ;;  %s680_s9 = sshll.u32 %s763_s8, 4  ;;  %s681_s9 = int_to_ptr.vmem [resolvable:$false] %s680_s9 }
  0x34   : > { %s682_s10 = scalar_lea.vmem %s681_s9, 256  ;;  %p683_p9 = scmp.lt.s32.totalorder %s882_s22, %s681_s9 }
  0x35   : > { %p678_p6 = pnand %p676_p1, %p664_p7  ;;  %p684_p3 = scmp.lt.s32.totalorder %s682_s10, %s675_s7 }
  0x37   : > { %p679_p5 = pneg %p678_p6  ;;  %p685_p4 = por %p684_p3, %p683_p9 }
  0x39   : > { %p686_p8 = pnand %p685_p4, %p679_p5 }
  0x3b   : > { %689 = shalt.err (!%p686_p8)
}
  0x3c   : > { %s764_s11 = smov 64   ;;  %s765_s21 = smov 4  }
  0x3d   : > { %572 = dma.hbm_to_vmem [thread:$0]  (!%p878_p11), %s876_s17, 128, %s882_s22, %s884_s25, %s764_s11, %s764_s11, %s765_s21  }
  0x3e   : > { %p993_p1 = scmp.ne.s32.totalorder %s988_s20, 0 }
  0x3f   : > { %s908_s26 = sand.u32 (!%p993_p1), 1, %s750_s13   ;;  %p994_p4 = scmp.ne.s32.totalorder (!%p993_p1), %s986_s18, 0 }
  0x40   : > { %171 = sbr.rel (%p993_p1) target bundleno = 312 (0x138), region = 32  ;;  %s511_s27 = sshll.u32 (!%p993_p1), %s908_s26, 3 }
  0x41   : > { %s174_s28 = scalar_lea.sflag (!%p993_p1), [#allocation3], %s908_s26  ;;  %s177_s29 = scalar_lea.vmem (!%p993_p1), [#allocation2], %s511_s27 }
  0x45   : > { %733 = dma.done.wait (%p994_p4), %s174_s28, 128  }
  0x46   : > { %735 = vsyncadd (%p994_p4), %s174_s28, 4294967168  ;;  %p995_p6 = scmp.eq.s32.totalorder %s813_s16, 0 }
  0x48   : > { %737 = dma.done.wait (%p995_p6), [#allocation6], 1152   ;;  %p996_p8 = pmov %p995_p6 }
  0x49   : > { %v766_v0 = vmov 0.0   ;;  %vm767_vm0 = vmmov 0   ;;  %v768_v1 = vmov 0   ;;  %v623_v2 = vld [vmem:[#allocation5 + $0x34] ss:$12 sps:$4 sm:$0xff]   ;;  %vm272_vm1 = vcmask 392192  }
  0x4a   : > { %739 = vsyncadd (%p996_p8), [#allocation6], 4294966144  ;;  %547 = vmatprep.subr.bf16.mxu1 %v766_v0  ;;  %553 = vmatprep.mubr.msk.bf16.mxu1 %vm767_vm0, %v766_v0  ;;  %v625_v3 = vld [vmem:[#allocation5 + $0x38] ss:$12 sps:$4 sm:$0xff]   ;;  %v626_v4 = vld [vmem:[#allocation5 + $0x30] ss:$12 sps:$4 sm:$0xff]   ;;  %v360_v12 = vlaneseq }
  0x4b   : > { %308 = vmatprep.mubr.bf16.mxu0 %v768_v1  ;;  %286 = vmatprep.subr.bf16.mxu0 %v623_v2  ;;  %v627_v5 = vld [vmem:[#allocation5 + $0x1c] ss:$12 sps:$4 sm:$0xff]   ;;  %v629_v6 = vld [vmem:[#allocation5 + $0x20] ss:$12 sps:$4 sm:$0xff]   ;;  %v630_v7 = vld [vmem:[#allocation5 + $0x18] ss:$12 sps:$4 sm:$0xff]  }
  0x4c   : > { %548 = vmatpush3.bf16.msra.mxu1 %v625_v3  ;;  %287 = vmatpush1.bf16.msra.mxu0 %v626_v4  ;;  %v631_v8 = vld [vmem:[#allocation5 + $0x4] ss:$12 sps:$4 sm:$0xff]   ;;  %v633_v9 = vld [vmem:[#allocation5 + $0x8] ss:$12 sps:$4 sm:$0xff]   ;;  %v634_v10 = vld [vmem:[#allocation5] ss:$12 sps:$4 sm:$0xff]  }
  0x4d   : > { %549 = vmatprep.subr.bf16.mxu1 %v766_v0  ;;  %288 = vmatprep.subr.bf16.mxu0 %v627_v5  ;;  %v635_v11 = vld [vmem:[%s177_s29] sm:$0xff]   ;;  %v361_v13 = vshrl.u32 %v360_v12, 7  ;;  %s537_s17 = sshll.u32 %s813_s16, 7  ;;  %s203_s22 = scalar_lea.vmem [#allocation7], %s511_s27 }
  0x4e   : > { %v526_v34 = vld [vmem:[%s980_s2] ss:$0 sm:$0xff]  ;;  %s420_s23 = sshll.u32 %s203_s22, 4  ;;  %s933_s4 = scalar_lea.hbm %s981_s3, %s537_s17  ;;  %s935_s23 = int_to_ptr.vmem [resolvable:$true] %s420_s23 }
  0x4f   : > { %v362_v19 = vadd.s32 8, %v361_v13  ;;  %vm378_vm2 = vcmp.lt.s32.totalorder %v361_v13, 7  ;;  %vm367_vm3 = vcmp.lt.s32.totalorder %v361_v13, 1  ;;  %vm363_vm4 = vcmp.ge.s32.totalorder %v361_v13, 1  ;;  %s407_s7 = scalar_lea.sflag [#allocation4], %s908_s26  ;;  %s690_s8 = scalar_lea.vmem %s935_s23, 128 }
  0x50   : > { %550 = vmatpush3.bf16.msra.mxu1 %v629_v6  ;;  %289 = vmatpush1.bf16.msra.mxu0 %v630_v7  ;;  %p691_p3 = scmp.ne.s32.totalorder %s935_s23, %s690_s8  ;;  %p997_p11 = scmp.ne.s32.totalorder %s991_s6, 0 }
  0x51   : > { %551 = vmatprep.subr.bf16.mxu1 %v766_v0  ;;  %290 = vmatprep.subr.bf16.mxu0 %v631_v8  ;;  %vm375_vm5 = vcmp.le.s32.totalorder %v362_v19, 14  ;;  %s769_s16 = smov [#allocation7]  }
  0x52   : > { %p692_p7 = pnand %p691_p3, %p997_p11  ;;  %s694_s9 = sshll.u32 %s769_s16, 4  ;;  %s695_s9 = int_to_ptr.vmem [resolvable:$false] %s694_s9 }
  0x53   : > { %s696_s10 = scalar_lea.vmem %s695_s9, 256  ;;  %p697_p10 = scmp.lt.s32.totalorder %s935_s23, %s695_s9 }
  0x54   : > { %552 = vmatpush3.bf16.msra.mxu1 %v633_v9  ;;  %291 = vmatpush1.bf16.msra.mxu0 %v634_v10  ;;  %p693_p12 = pneg %p692_p7  ;;  %p698_p2 = scmp.lt.s32.totalorder %s696_s10, %s690_s8 }
  0x56   : > { %p699_p13 = por %p698_p2, %p697_p10 }
  0x57   : > { %554 = vmatmul.mubr.msk.bf16.vlgmr.msra.gmra.mxu1 %vm272_vm1, %v635_v11  ;;  %524 = vmatmul.mubr.msk.bf16.vlgmr.msra.gmra.mxu0 %vm272_vm1, %v635_v11 }
  0x58   : > { %p700_p0 = pnand %p699_p13, %p693_p12 }
 0x117   : > { %v353_v14 = vpop.f32.mrf.mxu1  ;;  %v310_v15 = vpop.f32.mrf.mxu0 }
 0x118   : > { %v376_v17 = vrot.slane %v353_v14, 1  ;;  %v365_v23 = vrot.slane %v310_v15, 7 }
 0x119   : > { %v555_v16 = vpop.f32.mrf.mxu1  ;;  %v312_v18 = vpop.f32.mrf.mxu0 }
 0x11b   : > { %v356_v20 = vpop.f32.mrf.mxu1  ;;  %v314_v22 = vpop.f32.mrf.mxu0 }
 0x11c   : > { %v377_v21 = vrot.slane %v356_v20, 1  ;;  %v366_v24 = vrot.slane %v314_v22, 7 }
 0x11d   : > { %v556_v25 = vpop.f32.mrf.mxu1  ;;  %v316_v26 = vpop.f32.mrf.mxu0 }
 0x11e   : > { %v380_v27 = vsel %vm378_vm2, %v377_v21, %v376_v17  ;;  %v368_v28 = vsel %vm367_vm3, %v365_v23, %v366_v24  ;;  %v369_v29 = vsel %vm367_vm3, %v366_v24, %v365_v23  ;;  %v379_v35 = vsel %vm378_vm2, %v376_v17, %v377_v21 }
 0x11f   : > { %v370_v30 = vsel %vm363_vm4, %v369_v29, 0.0  ;;  %v373_v31 = vadd.f32 %v368_v28, %v316_v26  ;;  %v382_v33 = vsel %vm375_vm5, %v380_v27, 0.0 }
 0x120   : > { %v372_v32 = vadd.f32 %v370_v30, %v312_v18 }
 0x121   : > { %v384_v36 = vadd.f32 %v382_v33, %v373_v31 }
 0x122   : > { %v383_v37 = vadd.f32 %v379_v35, %v372_v32 }
 0x123   : > { %v393_v38 = vadd.f32 %v526_v34, %v384_v36 }
 0x124   : > { %v392_v39 = vadd.f32 %v526_v34, %v383_v37 }
 0x125   : > { %v395_v40 = vmax.f32 %v393_v38, 0.0 }
 0x126   : > { %v394_v41 = vmax.f32 %v392_v39, 0.0 }
 0x128   : > { %v541_v42 = vpack.c.bf16 %v395_v40, %v394_v41 }
 0x12a   : > { %542 = vst [vmem:[%s203_s22] sm:$0xff] %v541_v42  }
 0x12b   : > { %703 = shalt.err (!%p700_p0)
}
 0x12c   : > { %s704_s11 = scalar_lea.hbm %s933_s4, 128  ;;  %s708_s28 = scalar_lea.hbm %s981_s3, 256 }
 0x12d   : > { %p705_p5 = scmp.ne.s32.totalorder %s933_s4, %s704_s11  ;;  %p709_p4 = scmp.lt.s32.totalorder %s933_s4, %s981_s3 }
 0x12e   : > { %p710_p6 = scmp.lt.s32.totalorder %s708_s28, %s704_s11 }
 0x12f   : > { %p706_p9 = pnand %p705_p5, %p997_p11 }
 0x130   : > { %p711_p8 = por %p710_p6, %p709_p4 }
 0x131   : > { %p707_p1 = pneg %p706_p9 }
 0x133   : > { %p712_p3 = pnand %p711_p8, %p707_p1 }
 0x135   : > { %715 = shalt.err (!%p712_p3)
}
 0x136   : > { %s770_s20 = smov 64   ;;  %s771_s17 = smov 4  }
 0x137   : > { %563 = dma.vmem_to_hbm [thread:$0]  (%p997_p11), %s935_s23, 128, %s933_s4, %s407_s7, %s770_s20, %s770_s20, %s771_s17  }
 0x138 PF: > { %s435_s22 = sand.u32 1, %s746_s12   ;;  %p998_p7 = scmp.ne.s32.totalorder %s987_s19, 0 }
 0x139   : > { %p999_p12 = scmp.ge.s32.totalorder %s758_s15, 2  ;;  %s436_s25 = scalar_lea.sflag [#allocation4], %s435_s22 }
 0x13b   : > { %p574_p10 = pnand %p999_p12, %p998_p7 }
 0x13d   : > { %p575_p2 = pneg %p574_p10 }
 0x13f   : > { %741 = dma.done.wait (%p575_p2), %s436_s25, 128  }
 0x140   : > { %743 = vsyncadd (%p575_p2), %s436_s25, 4294967168  ;;  %p17_p13 = scmp.ge.s32.totalorder %s846_s24, 4   ;;  %s1000_s12 = smov %s750_s13 }
 0x141   : > { %s1001_s13 = smov %s754_s14  ;;  %s1002_s14 = smov %s863_s5 }
 0x142   : > { %s1003_s15 = smov %s846_s24  ;;  %19 = sbr.rel (!%p17_p13) target bundleno = 6 (0x6), region = 81 }
 0x147   :  { %441 = vsyncpa [#allocation3], 1 }
 0x148   :  { %443 = vsyncpa [#allocation3 + $0x1], 1 }
 0x149   :  { %444 = vsyncpa [#allocation6], 1 }
 0x14a   :  { %445 = vsyncpa [#allocation4], 1 }
 0x14b   :  { %447 = vsyncpa [#allocation4 + $0x1], 1 }

</bundles_post_ra>
